<compile_context>
chip_gen: v7x
topology: tpu7x:2x2x1
jax: 0.10.0
libtpu: 0.0.40
codegen_flags: <defaults>
</compile_context>

<pallas_src>
import math
from functools import partial

import jax
import jax.numpy as jnp
from jax import lax
from jax.experimental import pallas as pl
from jax.experimental.pallas import tpu as pltpu


_MASK_VALUE = -0.7 * float(jnp.finfo(jnp.float32).max)   # finite "-inf" (NaN-free)


def _fit(dim, tile):
    """Largest tile <= preferred that evenly divides dim (dim itself if small)."""
    if dim <= tile:
        return dim
    for t in range(tile, 0, -1):
        if dim % t == 0:
            return t
    return dim


def _precision(compute_dtype):
    # Full f32 MXU passes only when f32 numerics are requested; bf16 operands
    # use the default single-pass MXU path.
    return lax.Precision.HIGHEST if compute_dtype == jnp.float32 else None


# --------------------------------------------------------------------------
# Tiled linear:  y = x @ W + b     (W stored (in_features, out_features))
# --------------------------------------------------------------------------
def _linear_kernel(x_ref, w_ref, b_ref, o_ref, *, compute_dtype):
    acc = jnp.dot(
        x_ref[...].astype(compute_dtype),
        w_ref[...].astype(compute_dtype),
        preferred_element_type=jnp.float32,
        precision=_precision(compute_dtype),
    )
    o_ref[...] = (acc + b_ref[...].astype(jnp.float32)).astype(o_ref.dtype)


def _linear(x2d, w, b, *, tm=512, tn=256, compute_dtype=jnp.bfloat16):
    """Full-K streaming matmul: grid (M//tm, N//tn); K = n_embed fits VMEM, so
    there is no reduction axis and no accumulator read-modify-write."""
    M, K = x2d.shape
    Kw, N = w.shape
    assert K == Kw
    tm, tn = _fit(M, tm), _fit(N, tn)
    b2d = b.reshape(1, N)
    return pl.pallas_call(
        partial(_linear_kernel, compute_dtype=compute_dtype),
        out_shape=jax.ShapeDtypeStruct((M, N), x2d.dtype),
        grid_spec=pltpu.PrefetchScalarGridSpec(
            num_scalar_prefetch=0,
            grid=(M // tm, N // tn),
            in_specs=[
                # x block index depends only on i -> stays resident across the
                # inner n axis (loaded once per row stripe).
                pl.BlockSpec((tm, K), lambda i, j: (i, 0)),
                pl.BlockSpec((K, tn), lambda i, j: (0, j)),
                pl.BlockSpec((1, tn), lambda i, j: (0, j)),
            ],
            out_specs=pl.BlockSpec((tm, tn), lambda i, j: (i, j)),
        ),
        compiler_params=pltpu.CompilerParams(
            dimension_semantics=("parallel", "parallel")),
    )(x2d, w, b2d)


# --------------------------------------------------------------------------
# Flash-style causal attention: (B, H, T, hd) -> lane-dense (B, T, C)
# --------------------------------------------------------------------------
def _flash_attn_kernel(q_ref, k_ref, v_ref, o_ref, m_scr, l_scr, acc_scr,
                       *, tq, tk, n_head, compute_dtype):
    qi = pl.program_id(1)
    ki = pl.program_id(2)

    @pl.when(ki == 0)
    def _():
        m_scr[...] = jnp.full_like(m_scr, _MASK_VALUE)
        l_scr[...] = jnp.zeros_like(l_scr)
        acc_scr[...] = jnp.zeros_like(acc_scr)

    q_first = qi * tq
    q_last = q_first + (tq - 1)
    k_first = ki * tk
    k_last = k_first + (tk - 1)

    def update(masked):
        # 1/sqrt(hd) is pre-folded into the Q projection weights -> no per-step
        # scale multiply here.
        q = q_ref[0].astype(compute_dtype)                     # (H, tq, hd)
        k = k_ref[0].astype(compute_dtype)                     # (H, tk, hd)
        v = v_ref[0].astype(compute_dtype)                     # (H, tk, hd)

        # Head-batched score matmul contracting hd directly (no K transpose).
        s = jnp.einsum("hqd,hkd->hqk", q, k,
                       preferred_element_type=jnp.float32,
                       precision=_precision(compute_dtype))    # (H, tq, tk)

        if masked:  # only the diagonal-crossing tile pays for iota/compare/select
            row = q_first + lax.broadcasted_iota(jnp.int32, (tq, tk), 0)
            col = k_first + lax.broadcasted_iota(jnp.int32, (tq, tk), 1)
            s = jnp.where((col <= row)[None, :, :], s, _MASK_VALUE)

        # Online softmax update (f32 running stats).
        m_prev = m_scr[...]
        m_new = jnp.maximum(m_prev, s.max(axis=-1, keepdims=True))
        alpha = jnp.exp(m_prev - m_new)
        p = jnp.exp(s - m_new)
        l_scr[...] = alpha * l_scr[...] + p.sum(axis=-1, keepdims=True)
        acc_scr[...] = alpha * acc_scr[...] + jnp.einsum(
            "hqk,hkd->hqd", p.astype(compute_dtype), v,
            preferred_element_type=jnp.float32,
            precision=_precision(compute_dtype))
        m_scr[...] = m_new

    # Fully-unmasked interior tiles (strictly below the diagonal block).
    @pl.when(k_last <= q_first)
    def _():
        update(masked=False)

    # Diagonal-crossing tiles need the causal mask.  Tiles fully above the
    # diagonal fall through both branches (compute skipped; their DMA is also
    # skipped via the clamped kv index_map in the wrapper).
    @pl.when(jnp.logical_and(k_last > q_first, k_first <= q_last))
    def _():
        update(masked=True)

    @pl.when(ki == pl.num_programs(2) - 1)
    def _():
        # Exact normalization for parity with the reference.  (Causal => every
        # query row has >= 1 unmasked key, so l > 0.  pl.reciprocal(approx=True)
        # is cheaper but breaks tight f32 parity.)
        inv_l = 1.0 / l_scr[...]
        o = acc_scr[...] * inv_l                               # (H, tq, hd) f32
        # Lane-dense store: concatenate heads along lanes -> (tq, H*hd = C),
        # so the output is written with full-width stores and feeds c_proj
        # directly with no HBM transpose.
        o_ref[0] = jnp.concatenate(
            [o[h] for h in range(n_head)], axis=-1).astype(o_ref.dtype)


def _flash_attention(q, k, v, *, tq=256, tk=256, compute_dtype=jnp.bfloat16,
                     out_dtype=None):
    B, H, T, hd = q.shape
    tq, tk = _fit(T, tq), _fit(T, tk)      # v5e: prefer tk=128 (128-deep MXU)
    C = H * hd
    out_dtype = out_dtype or q.dtype

    def q_index(b, qi, ki):
        return (b, 0, qi, 0)

    def kv_index(b, qi, ki):
        # Clamp to the last kv tile intersecting the causal region for this q
        # tile: above-diagonal steps keep the previous block index, so Pallas
        # skips their HBM->VMEM DMA entirely (up to ~2x less KV traffic).
        last_needed = (qi * tq + tq - 1) // tk
        return (b, 0, jnp.minimum(ki, last_needed), 0)

    def o_index(b, qi, ki):
        return (b, qi, 0)

    kernel = partial(_flash_attn_kernel, tq=tq, tk=tk, n_head=H,
                     compute_dtype=compute_dtype)
    return pl.pallas_call(
        kernel,
        out_shape=jax.ShapeDtypeStruct((B, T, C), out_dtype),
        grid_spec=pltpu.PrefetchScalarGridSpec(
            num_scalar_prefetch=0,
            grid=(B, T // tq, T // tk),
            in_specs=[
                pl.BlockSpec((1, H, tq, hd), q_index),
                # If profiling shows exposed KV DMA (bf16 shrinks per-tile
                # compute), add pipeline_mode=pl.Buffered(3) to k/v specs.
                pl.BlockSpec((1, H, tk, hd), kv_index),
                pl.BlockSpec((1, H, tk, hd), kv_index),
            ],
            out_specs=pl.BlockSpec((1, tq, C), o_index),
            scratch_shapes=[
                pltpu.VMEM((H, tq, 1), jnp.float32),    # running max  m
                pltpu.VMEM((H, tq, 1), jnp.float32),    # running sum  l
                pltpu.VMEM((H, tq, hd), jnp.float32),   # running output acc
            ],
        ),
        compiler_params=pltpu.CompilerParams(
            dimension_semantics=("parallel", "parallel", "arbitrary")),
    )(q, k, v)


# --------------------------------------------------------------------------
# Full forward: qkv projection -> flash attention -> output projection
# --------------------------------------------------------------------------
def causal_self_attention(x, w_attn, b_attn, w_proj, b_proj, n_head, *,
                          tq=256, tk=256, tm=512, tn=256,
                          compute_dtype=jnp.bfloat16):
    B, T, C = x.shape
    assert C % n_head == 0
    hd = C // n_head

    # Fold 1/sqrt(hd) into the Q projection weights/bias (one-time O(C^2) op,
    # hoisted/constant-folded under jit) so the attention kernel never rescales q.
    scale = 1.0 / math.sqrt(hd)
    w_attn = w_attn.at[:, :C].multiply(scale)
    b_attn = b_attn.at[:C].multiply(scale)

    qkv = _linear(x.reshape(B * T, C), w_attn, b_attn,
                  tm=tm, tn=tn, compute_dtype=compute_dtype)
    qkv = qkv.reshape(B, T, 3, n_head, hd)

    # Head-major (B, H, T, hd) layout for the attention kernel's batched MXU
    # matmuls; the transpose fuses with the compute_dtype cast (halves KV HBM
    # traffic when compute_dtype is bf16).  The output-side transpose is gone:
    # the attention kernel stores straight into lane-dense (B, T, C).
    q = qkv[:, :, 0].transpose(0, 2, 1, 3).astype(compute_dtype)
    k = qkv[:, :, 1].transpose(0, 2, 1, 3).astype(compute_dtype)
    v = qkv[:, :, 2].transpose(0, 2, 1, 3).astype(compute_dtype)

    y = _flash_attention(q, k, v, tq=tq, tk=tk, compute_dtype=compute_dtype,
                         out_dtype=x.dtype)                    # (B, T, C)

    out = _linear(y.reshape(B * T, C), w_proj, b_proj,
                  tm=tm, tn=tn, compute_dtype=compute_dtype)
    return out.reshape(B, T, C)


def _reference(x, w_attn, b_attn, w_proj, b_proj, n_head):
    """Pure-JAX reference mirroring the PyTorch forward (full f32 precision)."""
    B, T, C = x.shape
    hd = C // n_head
    hi = lax.Precision.HIGHEST
    qkv = jnp.matmul(x, w_attn, precision=hi) + b_attn
    q, k, v = jnp.split(qkv, 3, axis=-1)

    def heads(t):
        return t.reshape(B, T, n_head, hd).transpose(0, 2, 1, 3)

    q, k, v = heads(q), heads(k), heads(v)
    att = jnp.einsum("bhqd,bhkd->bhqk", q, k, precision=hi) * (1.0 / math.sqrt(hd))
    mask = jnp.tril(jnp.ones((T, T), dtype=bool))
    att = jnp.where(mask[None, None], att, -jnp.inf)
    att = jax.nn.softmax(att, axis=-1)
    y = jnp.einsum("bhqk,bhkd->bhqd", att, v, precision=hi)
    y = y.transpose(0, 2, 1, 3).reshape(B, T, C)
    return jnp.matmul(y, w_proj, precision=hi) + b_proj


if __name__ == "__main__":
    # Small config consistent with the module (n_embed divisible by n_head).
    B, T = 2, 8
    n_embed, n_head = 32, 4

    key = jax.random.PRNGKey(0)
    kx, kw1, kb1, kw2, kb2 = jax.random.split(key, 5)

    x = jax.random.normal(kx, (B, T, n_embed), dtype=jnp.float32)

    # nn.Linear default init: U(-1/sqrt(fan_in), 1/sqrt(fan_in)); stored (in, out).
    bound = 1.0 / math.sqrt(n_embed)
    w_attn = jax.random.uniform(kw1, (n_embed, 3 * n_embed),
                                minval=-bound, maxval=bound, dtype=jnp.float32)
    b_attn = jax.random.uniform(kb1, (3 * n_embed,),
                                minval=-bound, maxval=bound, dtype=jnp.float32)
    w_proj = jax.random.uniform(kw2, (n_embed, n_embed),
                                minval=-bound, maxval=bound, dtype=jnp.float32)
    b_proj = jax.random.uniform(kb2, (n_embed,),
                                minval=-bound, maxval=bound, dtype=jnp.float32)

    ref = _reference(x, w_attn, b_attn, w_proj, b_proj, n_head)

    # 1) f32 parity path: HIGHEST-precision matmuls + exact softmax divide.
    out_f32 = causal_self_attention(x, w_attn, b_attn, w_proj, b_proj, n_head,
                                    compute_dtype=jnp.float32)
    out_f32 = jax.block_until_ready(out_f32)
    assert out_f32.shape == (B, T, n_embed)
    assert jnp.allclose(out_f32, ref, atol=2e-3, rtol=2e-3), "f32 mismatch vs reference"

    # 2) Production default: bf16 MXU operands, f32 accumulation (loose check).
    out_bf16 = jax.block_until_ready(
        causal_self_attention(x, w_attn, b_attn, w_proj, b_proj, n_head))
    assert out_bf16.shape == (B, T, n_embed)
    assert bool(jnp.isfinite(out_bf16).all())
    assert jnp.allclose(out_bf16, ref, atol=1e-1, rtol=1e-1), "bf16 path deviates too far"

    print("KERNEL_OK")
</pallas_src>

<mosaic_0001>
module attributes {stable_mosaic.version = 11 : i64} {
  func.func @_linear_kernel(%arg0: i32, %arg1: i32, %arg2: memref<16x32xf32, #tpu.memory_space<vmem>>, %arg3: memref<32x96xf32, #tpu.memory_space<vmem>>, %arg4: memref<1x96xf32, #tpu.memory_space<vmem>>, %arg5: memref<16x96xf32, #tpu.memory_space<vmem>>) attributes {dimension_semantics = [#tpu.dimension_semantics<parallel>, #tpu.dimension_semantics<parallel>], iteration_bounds = array<i64: 1, 1>, scalar_prefetch = 0 : i64, scratch_operands = 0 : i64, tpu.core_type = #tpu.core_type<tc>, window_params = [{transform_indices = @transform_0, window_bounds = array<i64: 16, 32>}, {transform_indices = @transform_1, window_bounds = array<i64: 32, 96>}, {transform_indices = @transform_2, window_bounds = array<i64: 1, 96>}, {transform_indices = @transform_3, window_bounds = array<i64: 16, 96>}]} {
    %c0 = arith.constant 0 : index
    %c0_0 = arith.constant 0 : index
    %0 = vector.load %arg2[%c0, %c0_0] : memref<16x32xf32, #tpu.memory_space<vmem>>, vector<16x32xf32>
    %c0_1 = arith.constant 0 : index
    %c0_2 = arith.constant 0 : index
    %1 = vector.load %arg3[%c0_1, %c0_2] : memref<32x96xf32, #tpu.memory_space<vmem>>, vector<32x96xf32>
    %cst = arith.constant dense<0.000000e+00> : vector<16x96xf32>
    %2 = tpu.matmul %0, %1, %cst {dimension_numbers = #tpu.dot_dimension_numbers<[1], [0], [0], [1], [0, 0, 1, 1], [], []>, precision = #tpu.contract_precision<fp32>} : vector<16x32xf32>, vector<32x96xf32>, vector<16x96xf32> -> vector<16x96xf32>
    %c0_3 = arith.constant 0 : index
    %c0_4 = arith.constant 0 : index
    %3 = vector.load %arg4[%c0_3, %c0_4] : memref<1x96xf32, #tpu.memory_space<vmem>>, vector<1x96xf32>
    %4 = vector.broadcast %3 : vector<1x96xf32> to vector<16x96xf32>
    %5 = arith.addf %2, %4 : vector<16x96xf32>
    %c0_5 = arith.constant 0 : index
    %c0_6 = arith.constant 0 : index
    %6 = vector.load %arg5[%c0_5, %c0_6] : memref<16x96xf32, #tpu.memory_space<vmem>>, vector<16x96xf32>
    tpu.vector_store %arg5[%c0_5, %c0_6], %5 {strides = array<i32>} : memref<16x96xf32, #tpu.memory_space<vmem>>, vector<16x96xf32>,
    return
  }
  func.func @transform_0(%arg0: i32, %arg1: i32) -> (i32, i32) {
    %c0_i32 = arith.constant 0 : i32
    %c0_i32_0 = arith.constant 0 : i32
    return %arg0, %c0_i32 : i32, i32
  }
  func.func @transform_1(%arg0: i32, %arg1: i32) -> (i32, i32) {
    %c0_i32 = arith.constant 0 : i32
    %c0_i32_0 = arith.constant 0 : i32
    return %c0_i32, %arg1 : i32, i32
  }
  func.func @transform_2(%arg0: i32, %arg1: i32) -> (i32, i32) {
    %c0_i32 = arith.constant 0 : i32
    %c0_i32_0 = arith.constant 0 : i32
    return %c0_i32, %arg1 : i32, i32
  }
  func.func @transform_3(%arg0: i32, %arg1: i32) -> (i32, i32) {
    %c0_i32 = arith.constant 0 : i32
    return %arg0, %arg1 : i32, i32
  }
}

</mosaic_0001>

<bundles_post_ra>
// kernel: tpu_custom_call.1
= control target key start
LH: loop header
LB: loop body
LE: loop exit
PB: predicated region body
PF: predicated region fallthrough
CT: control target
= control target key end

     0   :  { %8 = vsyncpa [#allocation3], 0  ;;  %s937_s0 = inlined_call_operand.hbm [shape: f32[16,32], index: 0, kind: input, shape index: {}]   ;;  %s938_s1 = inlined_call_operand.hbm [shape: f32[32,96], index: 1, kind: input, shape index: {}]   ;;  %s939_s2 = inlined_call_operand.vmem [shape: f32[1,96], index: 2, kind: input, shape index: {}]   ;;  %s940_s3 = inlined_call_operand.hbm [shape: f32[16,96], index: 3, kind: output, shape index: {}]  }
   0x1   :  { %9 = vsyncpa [#allocation6], 0 }
   0x2   :  { %10 = vsyncpa [#allocation4], 0  ;;  %s852_s12 = smov [#allocation2]   ;;  %s780_s16 = scalar_lea.hbm %s937_s0, 256 }
   0x3   :  { %s16_s13 = sshll.u32 %s852_s12, 4  ;;  %p781_p0 = scmp.ne.s32.totalorder %s937_s0, %s780_s16  ;;  %s17_s13 = int_to_ptr.vmem [resolvable:$true] %s16_s13 }
   0x4   :  { %p784_p1 = scmp.lt.u32.totalorder %s780_s16, %s937_s0 }
   0x6   :  { %p786_p2 = pnand %p784_p1, %p781_p0 }
   0x8   :  { %789 = shalt.err (!%p786_p2)
}
   0x9   :  { %s790_s21 = scalar_lea.vmem %s17_s13, 256  ;;  %p795_p4 = scmp.lt.s32.totalorder %s17_s13, %s17_s13 }
   0xa   :  { %p791_p3 = scmp.ne.s32.totalorder %s17_s13, %s790_s21  ;;  %p796_p5 = scmp.lt.s32.totalorder %s790_s21, %s790_s21 }
   0xc   :  { %p797_p6 = por %p796_p5, %p795_p4 }
   0xe   :  { %p798_p7 = pnand %p797_p6, %p791_p3 }
  0x10   :  { %801 = shalt.err (!%p798_p7)
}
  0x11   :  { %s853_s22 = smov 128   ;;  %s854_s23 = smov 8  }
  0x12   :  { %22 = dma.hbm_to_vmem [thread:$0]  %s937_s0, 256, %s17_s13, [#allocation3], %s853_s22, %s853_s22, %s854_s23  }
  0x13   :  { %s855_s26 = smov [#allocation5]   ;;  %s802_s30 = scalar_lea.hbm %s938_s1, 512 }
  0x14   :  { %s28_s27 = sshll.u32 %s855_s26, 4  ;;  %p803_p8 = scmp.ne.s32.totalorder %s938_s1, %s802_s30  ;;  %s29_s27 = int_to_ptr.vmem [resolvable:$true] %s28_s27 }
  0x15   :  { %p806_p9 = scmp.lt.u32.totalorder %s802_s30, %s938_s1 }
  0x17   :  { %p808_p10 = pnand %p806_p9, %p803_p8 }
  0x19   :  { %811 = shalt.err (!%p808_p10)
}
  0x1a   :  { %s812_s8 = scalar_lea.vmem %s29_s27, 512  ;;  %p817_p12 = scmp.lt.s32.totalorder %s29_s27, %s29_s27 }
  0x1b   :  { %p813_p11 = scmp.ne.s32.totalorder %s29_s27, %s812_s8  ;;  %p818_p13 = scmp.lt.s32.totalorder %s812_s8, %s812_s8 }
  0x1d   :  { %p819_p0 = por %p818_p13, %p817_p12 }
  0x1f   :  { %p820_p1 = pnand %p819_p0, %p813_p11 }
  0x21   :  { %823 = shalt.err (!%p820_p1)
}
  0x22   :  { %34 = dma.hbm_to_vmem [thread:$0]  %s938_s1, 512, %s29_s27, [#allocation6], %s853_s22, %s853_s22, %s854_s23  }
  0x23   :  { %846 = dma.done.wait [#allocation3], 256  }
  0x24   :  { %847 = vsyncadd [#allocation3], 4294967040 }
  0x25   :  { %848 = dma.done.wait [#allocation6], 512  }
  0x26   :  { %849 = vsyncadd [#allocation6], 4294966784  ;;  %vm56_vm0 = vcmask 261120   ;;  %v45_v0 = vld [vmem:[#allocation5] sm:$0xff]  ;;  %v46_v1 = vld [vmem:[#allocation5 + $0x8] sm:$0xff]  ;;  %s856_s11 = smov [#allocation7]  }
  0x27   :  { %v47_v2 = vld [vmem:[#allocation5 + $0x10] sm:$0xff]  ;;  %v64_v3 = vand.u32 4294901760, %v45_v0  ;;  %v67_v4 = vand.u32 4294901760, %v46_v1  ;;  %v48_v5 = vld [vmem:[#allocation5 + $0x18] sm:$0xff]  ;;  %s599_s12 = sshll.u32 %s856_s11, 4  ;;  %vm591_vm1 = vcmask 785408   ;;  %s600_s12 = int_to_ptr.vmem [resolvable:$true] %s599_s12 }
  0x28   :  { %v70_v6 = vand.u32 4294901760, %v47_v2  ;;  %v43_v7 = vld [vmem:[#allocation2] sm:$0xff]  ;;  %v44_v8 = vld [vmem:[#allocation2 + $0x8] sm:$0xff]  ;;  %v73_v9 = vand.u32 4294901760, %v48_v5  ;;  %s824_s13 = scalar_lea.vmem %s600_s12, 256  ;;  %p829_p3 = scmp.lt.s32.totalorder %s600_s12, %s600_s12 }
  0x29   :  { %v58_v10 = vsel %vm56_vm0, %v43_v7, 0  ;;  %v61_v11 = vsel %vm56_vm0, %v44_v8, 0  ;;  %v715_v12 = vpack.c.bf16 %v67_v4, %v64_v3  ;;  %v154_v15 = vsub.f32 %v45_v0, %v64_v3  ;;  %v612_v46 = vld [vmem:[%s939_s2] ss:$0 sm:$0xff]  ;;  %p825_p2 = scmp.ne.s32.totalorder %s600_s12, %s824_s13  ;;  %p830_p4 = scmp.lt.s32.totalorder %s824_s13, %s824_s13 }
  0x2a   :  { %v907_v13 = vand.u32 4294901760, %v58_v10  ;;  %v909_v14 = vand.u32 4294901760, %v61_v11  ;;  %v719_v16 = vpack.c.bf16 %v73_v9, %v70_v6  ;;  %v161_v17 = vsub.f32 %v46_v1, %v67_v4 }
  0x2b   :  { %v168_v18 = vsub.f32 %v47_v2, %v70_v6  ;;  %v175_v19 = vsub.f32 %v48_v5, %v73_v9  ;;  %716 = vmatprep.subr.bf16.mxu1 %v715_v12  ;;  %740 = vmatprep.subr.bf16.mxu0 %v715_v12  ;;  %v155_v22 = vand.u32 4294901760, %v154_v15  ;;  %p831_p5 = por %p830_p4, %p829_p3 }
  0x2c   :  { %v133_v20 = vsub.f32 %v58_v10, %v907_v13  ;;  %v143_v21 = vsub.f32 %v61_v11, %v909_v14  ;;  %718 = vmatpush3.bf16.msra.mxu1 %v715_v12  ;;  %742 = vmatpush3.bf16.msra.mxu0 %v715_v12  ;;  %v162_v23 = vand.u32 4294901760, %v161_v17  ;;  %v731_v44 = vpack.c.bf16 %v161_v17, %v154_v15 }
  0x2d   :  { %v169_v24 = vand.u32 4294901760, %v168_v18  ;;  %v176_v25 = vand.u32 4294901760, %v175_v19  ;;  %720 = vmatprep.subr.bf16.mxu1 %v719_v16  ;;  %744 = vmatprep.subr.bf16.mxu0 %v719_v16  ;;  %v156_v28 = vsub.f32 %v154_v15, %v155_v22  ;;  %v735_v45 = vpack.c.bf16 %v175_v19, %v168_v18  ;;  %p832_p6 = pnand %p831_p5, %p825_p2 }
  0x2e   :  { %v134_v26 = vand.u32 4294901760, %v133_v20  ;;  %v144_v27 = vand.u32 4294901760, %v143_v21  ;;  %v163_v29 = vsub.f32 %v161_v17, %v162_v23  ;;  %v747_v30 = vpack.c.bf16 %v162_v23, %v155_v22 }
  0x2f   :  { %v170_v31 = vsub.f32 %v168_v18, %v169_v24  ;;  %v177_v32 = vsub.f32 %v175_v19, %v176_v25  ;;  %v157_v35 = vand.u32 4294901760, %v156_v28  ;;  %v751_v43 = vpack.c.bf16 %v176_v25, %v169_v24 }
  0x30   :  { %v135_v33 = vsub.f32 %v133_v20, %v134_v26  ;;  %690 = vmatprep.mubr.f32.mxu0 %v134_v26  ;;  %v145_v34 = vsub.f32 %v143_v21, %v144_v27  ;;  %722 = vmatpush3.bf16.msra.mxu1 %v719_v16  ;;  %v164_v36 = vand.u32 4294901760, %v163_v29 }
  0x31   :  { %746 = vmatpush3.bf16.msra.mxu0 %v719_v16  ;;  %v171_v37 = vand.u32 4294901760, %v170_v31  ;;  %v178_v38 = vand.u32 4294901760, %v177_v32 }
  0x32   :  { %v136_v39 = vand.u32 4294901760, %v135_v33  ;;  %v146_v40 = vand.u32 4294901760, %v145_v34  ;;  %748 = vmatprep.subr.bf16.mxu0 %v747_v30  ;;  %v723_v41 = vpack.c.bf16 %v164_v36, %v157_v35 }
  0x33   :  { %v727_v42 = vpack.c.bf16 %v178_v38, %v171_v37 }
  0x34   :  { %657 = vmatprep.mubr.f32.mxu1 %v136_v39  ;;  %691 = vmatmul.mubr.f32.vlgmr.msra.gmra.mrb[0].mxu0 %v144_v27 }
  0x35   :  { %658 = vmatmul.mubr.f32.vlgmr.msra.gmra.mrb[0].mxu1 %v146_v40  ;;  %724 = vmatprep.subr.bf16.mxu1 %v723_v41 }
  0x36   :  { %726 = vmatpush3.bf16.msra.mxu1 %v723_v41  ;;  %750 = vmatpush3.bf16.msra.mxu0 %v747_v30 }
  0x37   :  { %728 = vmatprep.subr.bf16.mxu1 %v727_v42  ;;  %752 = vmatprep.subr.bf16.mxu0 %v751_v43 }
  0x38   :  { %668 = vmatprep.mubr.f32.mxu1 %v907_v13  ;;  %701 = vmatprep.mubr.f32.mxu0 %v907_v13 }
  0x3a   :  { %730 = vmatpush3.bf16.msra.mxu1 %v727_v42  ;;  %754 = vmatpush3.bf16.msra.mxu0 %v751_v43 }
  0x3b   :  { %732 = vmatprep.subr.bf16.mxu1 %v731_v44  ;;  %756 = vmatprep.subr.bf16.mxu0 %v715_v12 }
  0x3d   :  { %669 = vmatmul.mubr.f32.vlgmr.msra.gmra.mrb[0].mxu1 %v909_v14  ;;  %702 = vmatmul.mubr.f32.vlgmr.msra.gmra.mrb[0].mxu0 %v909_v14 }
  0x3e   :  { %734 = vmatpush3.bf16.msra.mxu1 %v731_v44  ;;  %758 = vmatpush3.bf16.msra.mxu0 %v715_v12 }
  0x3f   :  { %736 = vmatprep.subr.bf16.mxu1 %v735_v45  ;;  %760 = vmatprep.subr.bf16.mxu0 %v719_v16 }
  0x40   :  { %679 = vmatprep.mubr.f32.mxu1 %v133_v20  ;;  %712 = vmatprep.mubr.f32.mxu0 %v907_v13 }
  0x42   :  { %738 = vmatpush3.bf16.msra.mxu1 %v735_v45  ;;  %762 = vmatpush3.bf16.msra.mxu0 %v719_v16 }
  0x45   :  { %680 = vmatmul.mubr.f32.vlgmr.msra.gmra.mrb[0].mxu1 %v143_v21  ;;  %713 = vmatmul.mubr.f32.vlgmr.msra.gmra.mrb[0].mxu0 %v909_v14 }
 0x118   :  { %v681_v47 = vpop.f32.mrb[0].mxu1  ;;  %v714_v48 = vpop.f32.mrb[0].mxu0 }
 0x119   :  { %v763_v49 = vadd.f32 %v681_v47, %v612_v46  ;;  %v325_v50 = vpop.f32.mrb[1].mxu1  ;;  %v581_v51 = vpop.f32.mrb[1].mxu0 }
 0x11a   :  { %v765_v52 = vadd.f32 %v612_v46, %v325_v50 }
 0x11b   :  { %v764_v53 = vadd.f32 %v763_v49, %v714_v48 }
 0x11c   :  { %v766_v54 = vadd.f32 %v765_v52, %v581_v51 }
 0x11d   :  { %593 = vst.msk [vmem:[#allocation7 + $0x8] sm:$0xff] %vm591_vm1, %v764_v53 }
 0x11e   :  { %592 = vst.msk [vmem:[#allocation7] sm:$0xff] %vm591_vm1, %v766_v54 }
 0x11f   :  { %835 = shalt.err (!%p832_p6)
}
 0x120   :  { %s836_s15 = scalar_lea.hbm %s940_s3, 256 }
 0x121   :  { %p837_p7 = scmp.ne.s32.totalorder %s940_s3, %s836_s15  ;;  %p840_p8 = scmp.lt.u32.totalorder %s836_s15, %s940_s3 }
 0x123   :  { %p842_p9 = pnand %p840_p8, %p837_p7 }
 0x125   :  { %845 = shalt.err (!%p842_p9)
}
 0x126   :  { %605 = dma.vmem_to_hbm [thread:$0]  %s600_s12, 256, %s940_s3, [#allocation4], %s853_s22, %s853_s22, %s854_s23  }
 0x127   :  { %850 = dma.done.wait [#allocation4], 256  }
 0x128   :  { %851 = vsyncadd [#allocation4], 4294967040 }
 0x129   :  { %609 = vsyncpa [#allocation3], 1 }
 0x12a   :  { %610 = vsyncpa [#allocation6], 1 }
 0x12b   :  { %611 = vsyncpa [#allocation4], 1 }

</bundles_post_ra>
